<compile_context>
chip_gen: v6e
topology: v6e:2x2x1
jax: 0.10.0
libtpu: 0.0.40
codegen_flags: <defaults>
</compile_context>

<pallas_src>
import jax
import jax.numpy as jnp
from jax import lax
from jax.experimental import pallas as pl
from jax.experimental.pallas import tpu as pltpu

_LANES = 128   # lane width of the flattened slab


def _round_up(v, m):
    return ((v + m - 1) // m) * m


def _max_block_rows():
    """Per-generation row cap: 1 MiB f32 blocks everywhere, 2 MiB on v6e/v7x."""
    try:
        kind = jax.devices()[0].device_kind.lower()
    except Exception:
        kind = ""
    if ("v6" in kind) or ("v7" in kind):
        return 4096   # 2 MiB/input buffer; double-buffered inputs + temps fit 32 MiB scoped VMEM
    return 2048       # v5e / v4 / unknown: stay well inside the 16 MiB default scoped VMEM


def _pow_term(x, gamma):
    """x ** gamma; small integer gamma uses repeated VPU multiplies (no EUP pow)."""
    g = float(gamma)
    if g == 0.0:
        return jnp.ones_like(x)
    if g.is_integer() and 1.0 <= g <= 8.0:
        r = x
        for _ in range(int(g) - 1):
            r = r * x
        return r
    return x ** g  # generic float exponent falls back to exp(g*log(x))


def _focal_map(x, t, *, alpha, gamma, logits, binary_targets):
    """Per-element focal loss in f32."""
    if logits:
        # stable binary_cross_entropy_with_logits (same closed form as the reference)
        bce = jnp.maximum(x, 0.0) - x * t + jnp.log(1.0 + jnp.exp(-jnp.abs(x)))
        pt = jnp.exp(-bce)
    elif binary_targets:
        # targets are exactly {0, 1}: 1 log instead of 2 logs + 1 exp per element
        pt = jnp.where(t > 0.5, x, 1.0 - x)
        bce = -jnp.maximum(jnp.log(pt), -100.0)
    else:
        # binary_cross_entropy: PyTorch clamps each log term at -100
        log_p = jnp.maximum(jnp.log(x), -100.0)
        log_1mp = jnp.maximum(jnp.log(1.0 - x), -100.0)
        bce = -(t * log_p + (1.0 - t) * log_1mp)
        pt = jnp.exp(-bce)
    f = _pow_term(1.0 - pt, gamma) * bce
    if float(alpha) != 1.0:
        f = float(alpha) * f
    return f


def _make_sum_kernel(*, last_valid_rows, mask_last, **fkw):
    def _compute(x_ref, t_ref):
        return _focal_map(x_ref[...].astype(jnp.float32),
                          t_ref[...].astype(jnp.float32), **fkw)

    def _store(psum_ref, f):
        # per-lane partial sums only; cross-lane reduce finishes in the wrapper
        psum_ref[...] = jnp.sum(f, axis=0, keepdims=True)[None]

    if not mask_last:
        def kernel(x_ref, t_ref, psum_ref):
            _store(psum_ref, _compute(x_ref, t_ref))
        return kernel

    def kernel(x_ref, t_ref, psum_ref):
        last = pl.num_programs(0) - 1

        @pl.when(pl.program_id(0) != last)
        def _():  # unmasked fast path for every full block
            _store(psum_ref, _compute(x_ref, t_ref))

        @pl.when(pl.program_id(0) == last)
        def _():  # only the final partial block pays for the mask
            f = _compute(x_ref, t_ref)
            row = lax.broadcasted_iota(jnp.int32, f.shape, 0)
            _store(psum_ref, jnp.where(row < last_valid_rows, f, 0.0))

    return kernel


def _make_map_kernel(**fkw):
    def kernel(x_ref, t_ref, map_ref):
        f = _focal_map(x_ref[...].astype(jnp.float32),
                       t_ref[...].astype(jnp.float32), **fkw)
        map_ref[...] = f.astype(map_ref.dtype)
    return kernel


def focal_loss(inputs, targets, alpha=1.0, gamma=2.0, logits=False, reduce=True,
               binary_targets=False):
    """JAX/Pallas equivalent of FocalLoss.forward.

    Inputs/targets keep their caller dtype (bf16 inputs / bool targets welcome);
    casting to f32 happens in-kernel.  `binary_targets=True` enables a cheaper
    logits=False path valid only for hard {0,1} targets.
    """
    orig_shape = inputs.shape
    in_dtype = inputs.dtype
    n = int(inputs.size)

    x = inputs.reshape(-1)   # free bitcast reshape of a contiguous array
    t = targets.reshape(-1)

    rem = n % _LANES
    if rem:
        # TODO(synk): the sub-128-element ragged tail still pays a full-array pad copy;
        # a fully in-kernel ragged path (1-D / BoundedSlice blocking) would remove it.
        pad = _LANES - rem
        # Loss-neutral pad values: contribute (numerically) zero to the sum, so no
        # in-kernel pad mask is needed for either logits mode.
        pad_x = 30.0 if logits else 1.0
        x = jnp.pad(x, (0, pad), constant_values=pad_x)
        t = jnp.pad(t, (0, pad), constant_values=1)

    rows = int(x.size) // _LANES

    max_rows = _max_block_rows()
    block_rows = min(max_rows, _round_up(rows, 8))
    if rows > 8:
        # keep >= ~4 grid steps so v7x's two TensorCores both get work
        block_rows = min(block_rows, max(8, _round_up(-(-rows // 4), 8)))
    num_blocks = -(-rows // block_rows)
    last_valid_rows = rows - (num_blocks - 1) * block_rows
    mask_last = (rows % block_rows) != 0   # only the final partial block needs masking

    x2d = x.reshape(rows, _LANES)
    t2d = t.reshape(rows, _LANES)

    in_specs = [
        pl.BlockSpec((block_rows, _LANES), lambda i: (i, 0)),
        pl.BlockSpec((block_rows, _LANES), lambda i: (i, 0)),
    ]
    fkw = dict(alpha=float(alpha), gamma=float(gamma), logits=bool(logits),
               binary_targets=bool(binary_targets) and not logits)
    bytes_in = (x2d.size * x2d.dtype.itemsize) + (t2d.size * t2d.dtype.itemsize)

    if reduce:
        psums = pl.pallas_call(
            _make_sum_kernel(last_valid_rows=last_valid_rows, mask_last=mask_last, **fkw),
            out_shape=jax.ShapeDtypeStruct((num_blocks, 1, _LANES), jnp.float32),
            grid_spec=pltpu.PrefetchScalarGridSpec(
                num_scalar_prefetch=0,
                grid=(num_blocks,),
                in_specs=in_specs,
                out_specs=pl.BlockSpec((1, 1, _LANES), lambda i: (i, 0, 0)),
            ),
            compiler_params=pltpu.CompilerParams(
                dimension_semantics=("parallel",),   # independent partial sums -> megacore OK
            ),
            cost_estimate=pl.CostEstimate(
                flops=12 * n,
                transcendentals=3 * n,
                bytes_accessed=bytes_in + num_blocks * _LANES * 4,
            ),
        )(x2d, t2d)
        # Final cross-lane / cross-block reduce in f32 (XLA reduces tree-wise).
        mean = jnp.sum(psums, dtype=jnp.float32) * jnp.float32(1.0 / n)
        return mean.astype(in_dtype)

    out_itemsize = jnp.dtype(in_dtype).itemsize
    f2d = pl.pallas_call(
        _make_map_kernel(**fkw),
        out_shape=jax.ShapeDtypeStruct((rows, _LANES), in_dtype),
        grid_spec=pltpu.PrefetchScalarGridSpec(
            num_scalar_prefetch=0,
            grid=(num_blocks,),
            in_specs=in_specs,
            out_specs=pl.BlockSpec((block_rows, _LANES), lambda i: (i, 0)),
        ),
        compiler_params=pltpu.CompilerParams(
            dimension_semantics=("parallel",),
        ),
        cost_estimate=pl.CostEstimate(
            flops=12 * n,
            transcendentals=3 * n,
            bytes_accessed=bytes_in + rows * _LANES * out_itemsize,
        ),
    )(x2d, t2d)
    if rem:
        return f2d.reshape(-1)[:n].reshape(orig_shape)
    return f2d.reshape(orig_shape)   # free bitcast when n % 128 == 0


def _focal_loss_ref(inputs, targets, alpha=1.0, gamma=2.0, logits=False, reduce=True):
    """Pure-JAX reference mirroring the PyTorch module."""
    x = inputs.astype(jnp.float32)
    t = targets.astype(jnp.float32)
    if logits:
        bce = jnp.maximum(x, 0.0) - x * t + jnp.log(1.0 + jnp.exp(-jnp.abs(x)))
    else:
        bce = -(t * jnp.maximum(jnp.log(x), -100.0)
                + (1.0 - t) * jnp.maximum(jnp.log(1.0 - x), -100.0))
    pt = jnp.exp(-bce)
    f = alpha * (1.0 - pt) ** gamma * bce
    return jnp.mean(f) if reduce else f


if __name__ == "__main__":
    key = jax.random.PRNGKey(0)
    ks = jax.random.split(key, 8)

    # 1) Module default (logits=False), 128-aligned size -> zero-copy path, 2 grid blocks.
    p = jax.nn.sigmoid(jax.random.normal(ks[0], (2, 4, 16, 16), jnp.float32))
    y = (jax.random.uniform(ks[1], (2, 4, 16, 16)) > 0.5).astype(jnp.float32)
    out = jax.block_until_ready(focal_loss(p, y, alpha=1.0, gamma=2.0))
    ref = _focal_loss_ref(p, y)
    assert jnp.allclose(out, ref, rtol=1e-5, atol=1e-6), (out, ref)

    # reduce=False: per-element map in the input dtype, free reshape (no pad, no slice).
    fmap = jax.block_until_ready(focal_loss(p, y, reduce=False))
    fref = _focal_loss_ref(p, y, reduce=False)
    assert fmap.shape == p.shape
    assert jnp.allclose(fmap, fref, rtol=1e-5, atol=1e-6)

    # Binary-targets fast path (1 log instead of 2 logs + 1 exp).
    outb = jax.block_until_ready(focal_loss(p, y, binary_targets=True))
    assert jnp.allclose(outb, ref, rtol=1e-5, atol=1e-6), (outb, ref)

    # 2) 128-aligned but partial final block (single block, masked-last-block path).
    p2 = jax.nn.sigmoid(jax.random.normal(ks[2], (5, 128), jnp.float32))
    y2 = (jax.random.uniform(ks[3], (5, 128)) > 0.5).astype(jnp.float32)
    out2 = jax.block_until_ready(focal_loss(p2, y2))
    assert jnp.allclose(out2, _focal_loss_ref(p2, y2), rtol=1e-5, atol=1e-6)

    # 3) Multi-block grid with a ragged last block (33 rows -> blocks of 16).
    p3 = jax.nn.sigmoid(jax.random.normal(ks[4], (33, 128), jnp.float32))
    y3 = (jax.random.uniform(ks[5], (33, 128)) > 0.5).astype(jnp.float32)
    out3 = jax.block_until_ready(focal_loss(p3, y3))
    assert jnp.allclose(out3, _focal_loss_ref(p3, y3), rtol=1e-5, atol=1e-6)

    # 4) Non-128-multiple element count exercises the loss-neutral pad fallback.
    p4 = jax.nn.sigmoid(jax.random.normal(ks[6], (2, 3, 7, 5), jnp.float32))
    y4 = (jax.random.uniform(ks[7], (2, 3, 7, 5)) > 0.5).astype(jnp.float32)
    out4 = jax.block_until_ready(focal_loss(p4, y4))
    assert jnp.allclose(out4, _focal_loss_ref(p4, y4), rtol=1e-5, atol=1e-6)
    fmap4 = jax.block_until_ready(focal_loss(p4, y4, reduce=False))
    assert fmap4.shape == p4.shape
    assert jnp.allclose(fmap4, _focal_loss_ref(p4, y4, reduce=False), rtol=1e-5, atol=1e-6)

    # 5) logits=True path.
    z = jax.random.normal(ks[0], (4, 8, 32), jnp.float32)
    yz = (jax.random.uniform(ks[1], (4, 8, 32)) > 0.5).astype(jnp.float32)
    outz = jax.block_until_ready(focal_loss(z, yz, logits=True))
    assert jnp.allclose(outz, _focal_loss_ref(z, yz, logits=True), rtol=1e-5, atol=1e-6)

    print("KERNEL_OK")
</pallas_src>

<mosaic_0001>
module attributes {stable_mosaic.version = 11 : i64} {
  func.func @kernel(%arg0: i32, %arg1: memref<8x128xf32, #tpu.memory_space<vmem>>, %arg2: memref<8x128xf32, #tpu.memory_space<vmem>>, %arg3: memref<1x1x128xf32, #tpu.memory_space<vmem>>) attributes {dimension_semantics = [#tpu.dimension_semantics<parallel>], iteration_bounds = array<i64: 2>, scalar_prefetch = 0 : i64, scratch_operands = 0 : i64, tpu.core_type = #tpu.core_type<tc>, window_params = [{transform_indices = @transform_0, window_bounds = array<i64: 8, 128>}, {transform_indices = @transform_1, window_bounds = array<i64: 8, 128>}, {transform_indices = @transform_2, window_bounds = array<i64: 1, 1, 128>}]} {
    %c0 = arith.constant 0 : index
    %c0_0 = arith.constant 0 : index
    %0 = vector.load %arg1[%c0, %c0_0] : memref<8x128xf32, #tpu.memory_space<vmem>>, vector<8x128xf32>
    %c0_1 = arith.constant 0 : index
    %c0_2 = arith.constant 0 : index
    %1 = vector.load %arg2[%c0_1, %c0_2] : memref<8x128xf32, #tpu.memory_space<vmem>>, vector<8x128xf32>
    %2 = math.log %0 : vector<8x128xf32>
    %cst = arith.constant -1.000000e+02 : f32
    %3 = vector.broadcast %cst : f32 to vector<8x128xf32>
    %4 = arith.maximumf %2, %3 : vector<8x128xf32>
    %cst_3 = arith.constant 1.000000e+00 : f32
    %5 = vector.broadcast %cst_3 : f32 to vector<8x128xf32>
    %6 = arith.subf %5, %0 : vector<8x128xf32>
    %7 = math.log %6 : vector<8x128xf32>
    %cst_4 = arith.constant -1.000000e+02 : f32
    %8 = vector.broadcast %cst_4 : f32 to vector<8x128xf32>
    %9 = arith.maximumf %7, %8 : vector<8x128xf32>
    %10 = arith.mulf %1, %4 : vector<8x128xf32>
    %cst_5 = arith.constant 1.000000e+00 : f32
    %11 = vector.broadcast %cst_5 : f32 to vector<8x128xf32>
    %12 = arith.subf %11, %1 : vector<8x128xf32>
    %13 = arith.mulf %12, %9 : vector<8x128xf32>
    %14 = arith.addf %10, %13 : vector<8x128xf32>
    %cst_6 = arith.constant 0.000000e+00 : f32
    %15 = vector.broadcast %cst_6 : f32 to vector<8x128xf32>
    %16 = arith.subf %15, %14 : vector<8x128xf32>
    %cst_7 = arith.constant 0.000000e+00 : f32
    %17 = vector.broadcast %cst_7 : f32 to vector<8x128xf32>
    %18 = arith.subf %17, %16 : vector<8x128xf32>
    %19 = math.exp %18 : vector<8x128xf32>
    %cst_8 = arith.constant 1.000000e+00 : f32
    %20 = vector.broadcast %cst_8 : f32 to vector<8x128xf32>
    %21 = arith.subf %20, %19 : vector<8x128xf32>
    %22 = arith.mulf %21, %21 : vector<8x128xf32>
    %23 = arith.mulf %22, %16 : vector<8x128xf32>
    %cst_9 = arith.constant dense<0.000000e+00> : vector<128xf32>
    %24 = vector.multi_reduction <add>, %23, %cst_9 [0] : vector<8x128xf32> to vector<128xf32>
    %25 = vector.shape_cast %24 : vector<128xf32> to vector<1x128xf32>
    %26 = vector.shape_cast %25 : vector<1x128xf32> to vector<1x1x128xf32>
    %c0_10 = arith.constant 0 : index
    %c0_11 = arith.constant 0 : index
    %c0_12 = arith.constant 0 : index
    %27 = vector.load %arg3[%c0_10, %c0_11, %c0_12] : memref<1x1x128xf32, #tpu.memory_space<vmem>>, vector<1x1x128xf32>
    tpu.vector_store %arg3[%c0_10, %c0_11, %c0_12], %26 {strides = array<i32>} : memref<1x1x128xf32, #tpu.memory_space<vmem>>, vector<1x1x128xf32>,
    return
  }
  func.func @transform_0(%arg0: i32) -> (i32, i32) {
    %c0_i32 = arith.constant 0 : i32
    %c0_i32_0 = arith.constant 0 : i32
    return %arg0, %c0_i32 : i32, i32
  }
  func.func @transform_1(%arg0: i32) -> (i32, i32) {
    %c0_i32 = arith.constant 0 : i32
    %c0_i32_0 = arith.constant 0 : i32
    return %arg0, %c0_i32 : i32, i32
  }
  func.func @transform_2(%arg0: i32) -> (i32, i32, i32) {
    %c0_i32 = arith.constant 0 : i32
    %c0_i32_0 = arith.constant 0 : i32
    %c0_i32_1 = arith.constant 0 : i32
    return %arg0, %c0_i32, %c0_i32_0 : i32, i32, i32
  }
}

</mosaic_0001>

<bundles_post_ra>
// kernel: tpu_custom_call.1
= control target key start
LH: loop header
LB: loop body
LE: loop exit
PB: predicated region body
PF: predicated region fallthrough
CT: control target
= control target key end

     0   :  { %7 = vsyncpa [#allocation3], 0  ;;  %s733_s0 = inlined_call_operand.hbm [shape: f32[16,128], index: 0, kind: input, shape index: {}]   ;;  %s734_s1 = inlined_call_operand.hbm [shape: f32[16,128], index: 1, kind: input, shape index: {}]   ;;  %s735_s2 = inlined_call_operand.hbm [shape: f32[2,1,128], index: 2, kind: output, shape index: {}]  }
   0x1   :  { %9 = vsyncpa [#allocation3 + $0x1], 0 }
   0x2   :  { %10 = vsyncpa [#allocation6], 0 }
   0x3   :  { %12 = vsyncpa [#allocation6 + $0x1], 0 }
   0x4   :  { %13 = vsyncpa [#allocation4], 0 }
   0x5   :  { %15 = vsyncpa [#allocation4 + $0x1], 0  ;;  %s538_s9 = smov 0   ;;  %s540_s10 = smov 0  }
   0x6   :  { %s542_s11 = smov 0   ;;  %s544_s12 = smov 0  }
   0x7 LB: > { %s559_s13 = sadd.s32 4294967295, %s518_s12   ;;  %s324_s14 = sadd.s32 4294967294, %s518_s12   ;;  %s518_s12 = sphi %s544_s12, %s754_s12   ;;  %s514_s11 = sphi %s542_s11, %s753_s11   ;;  %s510_s10 = sphi %s540_s10, %s752_s10   ;;  %s506_s9 = sphi %s538_s9, %s751_s9  }
   0x8   : > { %s563_s15 = sadd.s32 1, %s518_s12   ;;  %s28_s16 = sadd.s32 1, %s514_s11 }
   0x9   : > { %s25_s17 = ssub.s32 %s518_s12, %s563_s15  ;;  %p35_p0 = scmp.ne.s32.totalorder %s514_s11, %s510_s10 }
   0xa   : > { %p26_p1 = scmp.eq.s32.totalorder %s25_s17, 0  ;;  %p36_p2 = scmp.eq.s32.totalorder %s518_s12, 0 }
   0xb   : > { %p41_p3 = scmp.ne.s32.totalorder %s510_s10, %s506_s9  ;;  %p42_p4 = scmp.eq.s32.totalorder %s559_s13, 0 }
   0xc   : > { %s575_s18 = scalar_select %p26_p1, %s514_s11, %s28_s16  }
   0xd   : > { %p577_p5 = por %p36_p2, %p35_p0  ;;  %p581_p6 = por %p42_p4, %p41_p3 }
   0xe   : > { %p91_p7 = scmp.eq.s32.totalorder %s559_s13, 1  ;;  %p97_p8 = scmp.eq.s32.totalorder %s324_s14, 1 }
   0xf   : > { %s739_s20 = scalar_select %p581_p6, 1, 0 }
  0x10   : > { %p354_p10 = scmp.lt.s32.totalorder %s518_s12, 2  ;;  %p588_p11 = por %p91_p7, %p35_p0 }
  0x11   : > { %p592_p12 = por %p97_p8, %p41_p3  ;;  %s597_s23 = sand.u32 1, %s514_s11  }
  0x12   : > { %s740_s21 = scalar_select %p588_p11, 1, 0 }
  0x13   : > { %s741_s22 = scalar_select %p592_p12, 1, 0 }
  0x14   : > { %s328_s24 = sshll.u32 %s518_s12, 7  ;;  %s327_s25 = sshll.u32 %s597_s23, 3 }
  0x15   : > { %s606_s28 = scalar_lea.hbm %s733_s0, %s328_s24  ;;  %s121_s29 = scalar_lea.vmem [#allocation2], %s327_s25 }
  0x16   : > { %s128_s30 = sshll.u32 %s121_s29, 4  ;;  %p612_p13 = pnand %p354_p10, %p577_p5  ;;  %s616_s30 = int_to_ptr.vmem [resolvable:$true] %s128_s30 }
  0x17   : > { %s118_s4 = scalar_lea.sflag [#allocation3], %s597_s23  ;;  %s394_s5 = scalar_lea.hbm %s606_s28, 128 }
  0x18   : > { %p395_p2 = scmp.ne.s32.totalorder %s606_s28, %s394_s5  ;;  %p396_p3 = pneg %p612_p13 }
  0x19   : > { %s399_s8 = scalar_lea.hbm %s733_s0, 256  ;;  %p400_p5 = scmp.lt.s32.totalorder %s606_s28, %s733_s0 }
  0x1a   : > { %p397_p4 = pnand %p396_p3, %p395_p2  ;;  %p401_p8 = scmp.lt.s32.totalorder %s399_s8, %s394_s5 }
  0x1c   : > { %p398_p7 = pneg %p397_p4  ;;  %p402_p10 = por %p401_p8, %p400_p5 }
  0x1e   : > { %p403_p9 = pnand %p402_p10, %p398_p7 }
  0x20   : > { %406 = shalt.err (!%p403_p9)
}
  0x21   : > { %s407_s17 = scalar_lea.vmem %s616_s30, 128  ;;  %s520_s19 = smov [#allocation2]  }
  0x22   : > { %p408_p0 = scmp.ne.s32.totalorder %s616_s30, %s407_s17  ;;  %s412_s26 = sshll.u32 %s520_s19, 4  ;;  %s413_s26 = int_to_ptr.vmem [resolvable:$false] %s412_s26 }
  0x23   : > { %s414_s27 = scalar_lea.vmem %s413_s26, 256  ;;  %p415_p1 = scmp.lt.s32.totalorder %s616_s30, %s413_s26 }
  0x24   : > { %p410_p2 = pnand %p408_p0, %p396_p3  ;;  %p416_p12 = scmp.lt.s32.totalorder %s414_s27, %s407_s17 }
  0x26   : > { %p411_p4 = pneg %p410_p2  ;;  %p417_p11 = por %p416_p12, %p415_p1 }
  0x28   : > { %p418_p5 = pnand %p417_p11, %p411_p4 }
  0x2a   : > { %421 = shalt.err (!%p418_p5)
}
  0x2b   : > { %346 = dma.hbm_to_vmem [thread:$0]  (!%p612_p13), %s606_s28, 128, %s616_s30, %s118_s4  }
  0x2c   : > { %p743_p9 = scmp.lt.s32.totalorder %s518_s12, 3  ;;  %p744_p0 = scmp.ge.s32.totalorder %s518_s12, 1 }
  0x2d   : > { %s658_s7 = scalar_lea.hbm %s734_s1, %s328_s24  ;;  %s139_s8 = scalar_lea.vmem [#allocation5], %s327_s25 }
  0x2e   : > { %p649_p7 = pnand %p744_p0, %p743_p9  ;;  %s146_s14 = sshll.u32 %s139_s8, 4  ;;  %s147_s14 = int_to_ptr.vmem [resolvable:$true] %s146_s14 }
  0x2f   : > { %s136_s28 = scalar_lea.sflag [#allocation6], %s597_s23  ;;  %s422_s30 = scalar_lea.hbm %s658_s7, 128 }
  0x30   : > { %s745_s29 = scalar_select %p649_p7, 1, 0 }
  0x31   : > { %p423_p11 = scmp.ne.s32.totalorder %s658_s7, %s422_s30  ;;  %s427_s17 = scalar_lea.hbm %s734_s1, 256 }
  0x32   : > { %p428_p8 = scmp.lt.s32.totalorder %s658_s7, %s734_s1  ;;  %p429_p10 = scmp.lt.s32.totalorder %s427_s17, %s422_s30 }
  0x33   : > { %p425_p12 = pnand %p423_p11, %p396_p3 }
  0x34   : > { %p430_p2 = por %p429_p10, %p428_p8 }
  0x35   : > { %p426_p1 = pneg %p425_p12 }
  0x37   : > { %p431_p4 = pnand %p430_p2, %p426_p1 }
  0x39   : > { %434 = shalt.err (!%p431_p4)
}
  0x3a   : > { %s435_s25 = scalar_lea.vmem %s147_s14, 128  ;;  %s521_s23 = smov [#allocation5]  }
  0x3b   : > { %p436_p5 = scmp.ne.s32.totalorder %s147_s14, %s435_s25  ;;  %s440_s26 = sshll.u32 %s521_s23, 4  ;;  %s441_s26 = int_to_ptr.vmem [resolvable:$false] %s440_s26 }
  0x3c   : > { %s442_s27 = scalar_lea.vmem %s441_s26, 256  ;;  %p443_p11 = scmp.lt.s32.totalorder %s147_s14, %s441_s26 }
  0x3d   : > { %p438_p9 = pnand %p436_p5, %p396_p3  ;;  %p444_p12 = scmp.lt.s32.totalorder %s442_s27, %s435_s25 }
  0x3f   : > { %p439_p0 = pneg %p438_p9  ;;  %p445_p6 = por %p444_p12, %p443_p11 }
  0x41   : > { %p446_p7 = pnand %p445_p6, %p439_p0 }
  0x43   : > { %449 = shalt.err (!%p446_p7)
}
  0x44   : > { %349 = dma.hbm_to_vmem [thread:$0]  (!%p612_p13), %s658_s7, 128, %s147_s14, %s136_s28  }
  0x45   : > { %p746_p1 = scmp.ne.s32.totalorder %s745_s29, 0 }
  0x46   : > { %s684_s5 = sand.u32 (!%p746_p1), 1, %s510_s10   ;;  %p747_p3 = scmp.ne.s32.totalorder (!%p746_p1), %s739_s20, 0 }
  0x47   : > { %155 = sbr.rel (%p746_p1) target bundleno = 155 (0x9b), region = 28  ;;  %s332_s6 = sshll.u32 (!%p746_p1), %s684_s5, 3 }
  0x48   : > { %s158_s8 = scalar_lea.sflag (!%p746_p1), [#allocation3], %s684_s5  ;;  %s161_s30 = scalar_lea.vmem (!%p746_p1), [#allocation2], %s332_s6 }
  0x4c   : > { %493 = dma.done.wait (%p747_p3), %s158_s8, 128  }
  0x4d   : > { %495 = vsyncadd (%p747_p3), %s158_s8, 4294967168  ;;  %s167_s3 = scalar_lea.sflag [#allocation6], %s684_s5  ;;  %s170_s7 = scalar_lea.vmem [#allocation5], %s332_s6 }
  0x4e   : > { %497 = dma.done.wait (%p747_p3), %s167_s3, 128  }
  0x4f   : > { %499 = vsyncadd (%p747_p3), %s167_s3, 4294967168  ;;  %v195_v0 = vld [vmem:[%s161_s30] sm:$0xff]  ;;  %v196_v3 = vld [vmem:[%s170_s7] sm:$0xff]  ;;  %s194_s20 = scalar_lea.vmem [#allocation7], %s684_s5  ;;  %s334_s14 = sshll.u32 %s559_s13, 4 }
  0x50   : > { %388 = vlog2.f32 %v195_v0  ;;  %v200_v1 = vsub.f32 1.0, %v195_v0  ;;  %v205_v8 = vsub.f32 1.0, %v196_v3  ;;  %s235_s29 = sshll.u32 %s194_s20, 4  ;;  %s233_s16 = scalar_lea.hbm %s735_s2, %s334_s14  ;;  %s236_s29 = int_to_ptr.vmem [resolvable:$true] %s235_s29 }
  0x51   : > { %s223_s17 = scalar_lea.sflag [#allocation4], %s684_s5  ;;  %s450_s24 = scalar_lea.vmem %s236_s29, 16 }
  0x52   : > { %390 = vlog2.f32 %v200_v1  ;;  %p451_p6 = scmp.ne.s32.totalorder %s236_s29, %s450_s24  ;;  %p748_p13 = scmp.ne.s32.totalorder %s740_s21, 0 }
  0x53   : > { %s522_s19 = smov [#allocation7]  }
  0x54   : > { %p452_p7 = pnand %p451_p6, %p748_p13  ;;  %s454_s25 = sshll.u32 %s522_s19, 4  ;;  %s455_s25 = int_to_ptr.vmem [resolvable:$false] %s454_s25 }
  0x55   : > { %s456_s23 = scalar_lea.vmem %s455_s25, 32  ;;  %p457_p10 = scmp.lt.s32.totalorder %s236_s29, %s455_s25 }
  0x56   : > { %p453_p8 = pneg %p452_p7  ;;  %p458_p2 = scmp.lt.s32.totalorder %s456_s23, %s450_s24 }
  0x58   : > { %p459_p4 = por %p458_p2, %p457_p10 }
  0x5a   : > { %p460_p5 = pnand %p459_p4, %p453_p8 }
  0x5d   : > { %v389_v2 = vpop.eup %388 }
  0x5e   : > { %v198_v4 = vmul.f32 0.6931472, %v389_v2 }
  0x5f   : > { %v391_v5 = vpop.eup %390 }
  0x60   : > { %v199_v6 = vmax.f32 %v198_v4, -100.0  ;;  %v202_v7 = vmul.f32 0.6931472, %v391_v5 }
  0x62   : > { %v203_v9 = vmax.f32 %v202_v7, -100.0  ;;  %v204_v10 = vmul.f32 %v199_v6, %v196_v3 }
  0x64   : > { %v206_v11 = vmul.f32 %v205_v8, %v203_v9 }
  0x66   : > { %v207_v12 = vadd.f32 %v206_v11, %v204_v10 }
  0x68   : > { %v208_v13 = vsub.f32 0.0, %v207_v12 }
  0x6a   : > { %v209_v14 = vsub.f32 0.0, %v208_v13 }
  0x6c   : > { %v210_v15 = vmul.f32 1.442695, %v209_v14 }
  0x6e   : > { %392 = vpow2.f32 %v210_v15 }
  0x7b   : > { %v393_v16 = vpop.eup %392 }
  0x7c   : > { %v212_v17 = vsub.f32 1.0, %v393_v16 }
  0x7e   : > { %v213_v18 = vmul.f32 %v212_v17, %v212_v17 }
  0x80   : > { %v214_v19 = vmul.f32 %v213_v18, %v208_v13 }
  0x82   : > { %v215_v20 = vrot.slane %v214_v19, 4 }
  0x84   : > { %v216_v21 = vadd.f32 %v215_v20, %v214_v19 }
  0x86   : > { %v217_v22 = vrot.slane %v216_v21, 2 }
  0x88   : > { %v218_v23 = vadd.f32 %v217_v22, %v216_v21 }
  0x8a   : > { %v219_v24 = vrot.slane %v218_v23, 1 }
  0x8c   : > { %v220_v25 = vadd.f32 %v219_v24, %v218_v23 }
  0x8e   : > { %221 = vst [vmem:[%s194_s20] sm:$0x1] %v220_v25 }
  0x8f   : > { %463 = shalt.err (!%p460_p5)
}
  0x90   : > { %s464_s13 = scalar_lea.hbm %s233_s16, 16  ;;  %s468_s5 = scalar_lea.hbm %s735_s2, 32 }
  0x91   : > { %p465_p9 = scmp.ne.s32.totalorder %s233_s16, %s464_s13  ;;  %p469_p12 = scmp.lt.s32.totalorder %s233_s16, %s735_s2 }
  0x92   : > { %p470_p1 = scmp.lt.s32.totalorder %s468_s5, %s464_s13 }
  0x93   : > { %p466_p0 = pnand %p465_p9, %p748_p13 }
  0x94   : > { %p471_p3 = por %p470_p1, %p469_p12 }
  0x95   : > { %p467_p11 = pneg %p466_p0 }
  0x97   : > { %p472_p6 = pnand %p471_p3, %p467_p11 }
  0x99   : > { %475 = shalt.err (!%p472_p6)
}
  0x9a   : > { %341 = dma.vmem_to_hbm [thread:$0]  (%p748_p13), %s236_s29, 16, %s233_s16, %s223_s17  }
  0x9b PF: > { %s247_s30 = sand.u32 1, %s506_s9   ;;  %p749_p7 = scmp.ne.s32.totalorder %s741_s22, 0 }
  0x9c   : > { %p750_p8 = scmp.ge.s32.totalorder %s518_s12, 2  ;;  %s248_s3 = scalar_lea.sflag [#allocation4], %s247_s30 }
  0x9e   : > { %p351_p10 = pnand %p750_p8, %p749_p7 }
  0xa0   : > { %p352_p2 = pneg %p351_p10 }
  0xa2   : > { %501 = dma.done.wait (%p352_p2), %s248_s3, 16  }
  0xa3   : > { %503 = vsyncadd (%p352_p2), %s248_s3, 4294967280  ;;  %p18_p4 = scmp.ge.s32.totalorder %s563_s15, 4   ;;  %s751_s9 = smov %s510_s10 }
  0xa4   : > { %s752_s10 = smov %s514_s11  ;;  %s753_s11 = smov %s575_s18 }
  0xa5   : > { %s754_s12 = smov %s563_s15  ;;  %20 = sbr.rel (!%p18_p4) target bundleno = 7 (0x7), region = 86 }
  0xaa   :  { %252 = vsyncpa [#allocation3], 1 }
  0xab   :  { %254 = vsyncpa [#allocation3 + $0x1], 1 }
  0xac   :  { %255 = vsyncpa [#allocation6], 1 }
  0xad   :  { %257 = vsyncpa [#allocation6 + $0x1], 1 }
  0xae   :  { %258 = vsyncpa [#allocation4], 1 }
  0xaf   :  { %260 = vsyncpa [#allocation4 + $0x1], 1 }

</bundles_post_ra>
